<compile_context>
chip_gen: v7x
topology: tpu7x:2x2x1
jax: 0.10.0
libtpu: 0.0.40
codegen_flags: <defaults>
</compile_context>

<pallas_src>
import numpy as np
import jax
import jax.numpy as jnp
from jax.experimental import pallas as pl
from jax.experimental.pallas import tpu as pltpu


# Samples per grid step (batch lives on the 128-wide lane axis).
BLOCK_B = 128

# Packed parameter slab column layout (all segments 128-lane aligned):
#   [  0:128) : w1  (H, num_inputs) in cols [0:num_inputs)
#   [128:256) : w2  (H, H)          in cols [128:128+H)
#   [256:384) : b1  broadcast to (H, 128)
#   [384:512) : b2  broadcast to (H, 128)
#   [512:640) : w3  (fc3 weight as an (H,1) column) broadcast to (H, 128)
#   [640:768) : b3  scalar broadcast to (H, 128)
_SLAB_COLS = 768


# ----------------------------- Pallas kernel --------------------------------
def critic_kernel(xT_ref, p_ref, vT_ref):
    nin, bb = xT_ref.shape          # (num_inputs, BLOCK_B)
    H = p_ref.shape[0]

    # All slices start at 128-aligned lane offsets -> plain aligned vector loads.
    w1 = p_ref[:, 0:nin]            # (H, nin)
    w2 = p_ref[:, 128:128 + H]      # (H, H)
    b1 = p_ref[:, 256:256 + bb]     # (H, bb)  pre-broadcast bias
    b2 = p_ref[:, 384:384 + bb]     # (H, bb)
    w3 = p_ref[:, 512:512 + bb]     # (H, bb)  fc3 weights broadcast along lanes
    b3 = p_ref[0:1, 640:640 + bb]   # (1, bb)

    xT = xT_ref[...]                # (nin, bb) -- batch on lanes

    h1 = jnp.dot(w1, xT, preferred_element_type=jnp.float32) + b1
    h1 = jnp.maximum(h1, 0.0)

    h2 = jnp.dot(w2, h1, preferred_element_type=jnp.float32) + b2
    h2 = jnp.maximum(h2, 0.0)

    # fc3 has a single output unit: VPU multiply + cross-sublane reduce
    # instead of an MXU matmul with N=1.
    v = jnp.sum(w3 * h2, axis=0, keepdims=True) + b3      # (1, bb), lane-dense
    vT_ref[...] = v.astype(vT_ref.dtype)


# ------------------------------- wrapper -------------------------------------
def critic_forward(x, param_slab):
    """x: (B, num_inputs) f32; param_slab: (H, 768) f32. Returns (B, 1) f32."""
    B, nin = x.shape
    H = param_slab.shape[0]

    bpad = ((B + BLOCK_B - 1) // BLOCK_B) * BLOCK_B
    xT = jnp.pad(x.T.astype(jnp.float32), ((0, 0), (0, bpad - B)))   # (nin, bpad)

    grid = (bpad // BLOCK_B,)
    vT = pl.pallas_call(
        critic_kernel,
        out_shape=jax.ShapeDtypeStruct((1, bpad), jnp.float32),
        grid_spec=pltpu.PrefetchScalarGridSpec(
            num_scalar_prefetch=0,
            grid=grid,
            in_specs=[
                # batch block of observations, batch on lanes
                pl.BlockSpec((nin, BLOCK_B), lambda i: (0, i)),
                # single packed parameter slab, resident across the whole grid
                pl.BlockSpec((H, _SLAB_COLS), lambda i: (0, 0)),
            ],
            out_specs=pl.BlockSpec((1, BLOCK_B), lambda i: (0, i)),
        ),
        compiler_params=pltpu.CompilerParams(
            dimension_semantics=("parallel",),   # lets v7x split the batch across its 2 TCs
        ),
    )(xT, param_slab)

    return vT[0, :B].reshape(B, 1)


# ------------------------- parameter initialization --------------------------
def xavier_uniform(key, out_f, in_f, gain):
    # Matches torch.nn.init.xavier_uniform_: U(-a, a), a = gain*sqrt(6/(fan_in+fan_out))
    a = gain * np.sqrt(6.0 / (in_f + out_f))
    return jax.random.uniform(key, (out_f, in_f), jnp.float32, -a, a)


def init_critic_params(key, num_inputs, num_hidden):
    # PyTorch orientation: weight (out, in), bias (out,)
    k1, k2, k3 = jax.random.split(key, 3)
    w1 = xavier_uniform(k1, num_hidden, num_inputs, gain=np.sqrt(2.0))
    w2 = xavier_uniform(k2, num_hidden, num_hidden, gain=np.sqrt(2.0))
    w3 = xavier_uniform(k3, 1, num_hidden, gain=1.0)
    b1 = jnp.full((num_hidden,), 0.01, jnp.float32)
    b2 = jnp.full((num_hidden,), 0.01, jnp.float32)
    b3 = jnp.full((1,), 0.01, jnp.float32)
    return (w1, b1, w2, b2, w3, b3)


def pack_params(params):
    """Pack all Critic parameters into one (H, 768) f32 slab (single VMEM input)."""
    w1, b1, w2, b2, w3, b3 = params
    H, nin = w1.shape
    assert nin <= 128 and H <= 128, "slab layout assumes num_inputs, num_hidden <= 128"

    slab = np.zeros((H, _SLAB_COLS), np.float32)
    slab[:, 0:nin] = np.asarray(w1, np.float32)
    slab[:, 128:128 + H] = np.asarray(w2, np.float32)
    slab[:, 256:384] = np.asarray(b1, np.float32).reshape(H, 1)        # bias pre-broadcast
    slab[:, 384:512] = np.asarray(b2, np.float32).reshape(H, 1)
    slab[:, 512:640] = np.asarray(w3, np.float32).reshape(H, 1)        # fc3 weight column
    slab[:, 640:768] = float(np.asarray(b3, np.float32).reshape(-1)[0])
    return jnp.asarray(slab)


# ------------------------------- reference -----------------------------------
def critic_ref(x, params):
    w1, b1, w2, b2, w3, b3 = params
    h1 = jnp.maximum(x @ w1.T + b1, 0.0)
    h2 = jnp.maximum(h1 @ w2.T + b2, 0.0)
    return h2 @ w3.T + b3


# --------------------------------- main ---------------------------------------
if __name__ == "__main__":
    # Acrobot-v1 observation space has 6 dims; hidden = 32.
    # Use a rollout-sized batch (200) to exercise padding + a 2-step batch grid.
    num_inputs, num_hidden, batch = 6, 32, 200

    key = jax.random.PRNGKey(0)
    k_param, k_x = jax.random.split(key)
    params = init_critic_params(k_param, num_inputs, num_hidden)
    param_slab = pack_params(params)
    x = jax.random.normal(k_x, (batch, num_inputs), jnp.float32)

    v = critic_forward(x, param_slab)
    jax.block_until_ready(v)

    v_ref = critic_ref(x, params)
    np.testing.assert_allclose(np.asarray(v), np.asarray(v_ref), rtol=1e-5, atol=1e-5)
    assert v.shape == (batch, 1)

    print("KERNEL_OK")
</pallas_src>

<mosaic_0001>
module attributes {stable_mosaic.version = 11 : i64} {
  func.func @critic_kernel(%arg0: i32, %arg1: memref<6x128xf32, #tpu.memory_space<vmem>>, %arg2: memref<32x768xf32, #tpu.memory_space<vmem>>, %arg3: memref<1x128xf32, #tpu.memory_space<vmem>>) attributes {dimension_semantics = [#tpu.dimension_semantics<parallel>], iteration_bounds = array<i64: 2>, scalar_prefetch = 0 : i64, scratch_operands = 0 : i64, tpu.core_type = #tpu.core_type<tc>, window_params = [{transform_indices = @transform_0, window_bounds = array<i64: 6, 128>}, {pipeline_mode = #tpu.pipeline_mode<synchronous>, transform_indices = @transform_1, window_bounds = array<i64: 32, 768>}, {transform_indices = @transform_2, window_bounds = array<i64: 1, 128>}]} {
    %c0 = arith.constant 0 : index
    %c0_0 = arith.constant 0 : index
    %0 = vector.load %arg2[%c0, %c0_0] : memref<32x768xf32, #tpu.memory_space<vmem>>, vector<32x6xf32>
    %c0_1 = arith.constant 0 : index
    %c128 = arith.constant 128 : index
    %1 = vector.load %arg2[%c0_1, %c128] : memref<32x768xf32, #tpu.memory_space<vmem>>, vector<32x32xf32>
    %c0_2 = arith.constant 0 : index
    %c256 = arith.constant 256 : index
    %2 = vector.load %arg2[%c0_2, %c256] : memref<32x768xf32, #tpu.memory_space<vmem>>, vector<32x128xf32>
    %c0_3 = arith.constant 0 : index
    %c384 = arith.constant 384 : index
    %3 = vector.load %arg2[%c0_3, %c384] : memref<32x768xf32, #tpu.memory_space<vmem>>, vector<32x128xf32>
    %c0_4 = arith.constant 0 : index
    %c512 = arith.constant 512 : index
    %4 = vector.load %arg2[%c0_4, %c512] : memref<32x768xf32, #tpu.memory_space<vmem>>, vector<32x128xf32>
    %c0_5 = arith.constant 0 : index
    %c640 = arith.constant 640 : index
    %5 = vector.load %arg2[%c0_5, %c640] : memref<32x768xf32, #tpu.memory_space<vmem>>, vector<1x128xf32>
    %c0_6 = arith.constant 0 : index
    %c0_7 = arith.constant 0 : index
    %6 = vector.load %arg1[%c0_6, %c0_7] : memref<6x128xf32, #tpu.memory_space<vmem>>, vector<6x128xf32>
    %cst = arith.constant dense<0.000000e+00> : vector<32x128xf32>
    %7 = tpu.matmul %0, %6, %cst {dimension_numbers = #tpu.dot_dimension_numbers<[1], [0], [0], [1], [0, 0, 1, 1], [], []>} : vector<32x6xf32>, vector<6x128xf32>, vector<32x128xf32> -> vector<32x128xf32>
    %8 = arith.addf %7, %2 : vector<32x128xf32>
    %cst_8 = arith.constant 0.000000e+00 : f32
    %9 = vector.broadcast %cst_8 : f32 to vector<32x128xf32>
    %10 = arith.maximumf %8, %9 : vector<32x128xf32>
    %cst_9 = arith.constant dense<0.000000e+00> : vector<32x128xf32>
    %11 = tpu.matmul %1, %10, %cst_9 {dimension_numbers = #tpu.dot_dimension_numbers<[1], [0], [0], [1], [0, 0, 1, 1], [], []>} : vector<32x32xf32>, vector<32x128xf32>, vector<32x128xf32> -> vector<32x128xf32>
    %12 = arith.addf %11, %3 : vector<32x128xf32>
    %cst_10 = arith.constant 0.000000e+00 : f32
    %13 = vector.broadcast %cst_10 : f32 to vector<32x128xf32>
    %14 = arith.maximumf %12, %13 : vector<32x128xf32>
    %15 = arith.mulf %4, %14 : vector<32x128xf32>
    %cst_11 = arith.constant dense<0.000000e+00> : vector<128xf32>
    %16 = vector.multi_reduction <add>, %15, %cst_11 [0] : vector<32x128xf32> to vector<128xf32>
    %17 = vector.shape_cast %16 : vector<128xf32> to vector<1x128xf32>
    %18 = arith.addf %17, %5 : vector<1x128xf32>
    %c0_12 = arith.constant 0 : index
    %c0_13 = arith.constant 0 : index
    %19 = vector.load %arg3[%c0_12, %c0_13] : memref<1x128xf32, #tpu.memory_space<vmem>>, vector<1x128xf32>
    tpu.vector_store %arg3[%c0_12, %c0_13], %18 {strides = array<i32>} : memref<1x128xf32, #tpu.memory_space<vmem>>, vector<1x128xf32>,
    return
  }
  func.func @transform_0(%arg0: i32) -> (i32, i32) {
    %c0_i32 = arith.constant 0 : i32
    %c0_i32_0 = arith.constant 0 : i32
    return %c0_i32, %arg0 : i32, i32
  }
  func.func @transform_1(%arg0: i32) -> (i32, i32) {
    %c0_i32 = arith.constant 0 : i32
    %c0_i32_0 = arith.constant 0 : i32
    %c0_i32_1 = arith.constant 0 : i32
    return %c0_i32, %c0_i32_0 : i32, i32
  }
  func.func @transform_2(%arg0: i32) -> (i32, i32) {
    %c0_i32 = arith.constant 0 : i32
    %c0_i32_0 = arith.constant 0 : i32
    return %c0_i32, %arg0 : i32, i32
  }
}

</mosaic_0001>

<bundles_post_ra>
// kernel: tpu_custom_call.1
= control target key start
LH: loop header
LB: loop body
LE: loop exit
PB: predicated region body
PF: predicated region fallthrough
CT: control target
= control target key end

     0   :  { %7 = vsyncpa [#allocation3], 0  ;;  %s985_s0 = inlined_call_operand.hbm [shape: f32[6,256], index: 0, kind: input, shape index: {}]   ;;  %s986_s1 = inlined_call_operand.hbm [shape: f32[32,768], index: 1, kind: input, shape index: {}]   ;;  %s987_s2 = inlined_call_operand.hbm [shape: f32[1,256], index: 2, kind: output, shape index: {}]  }
   0x1   :  { %9 = vsyncpa [#allocation3 + $0x1], 0 }
   0x2   :  { %10 = vsyncpa [#allocation6], 0 }
   0x3   :  { %11 = vsyncpa [#allocation4], 0 }
   0x4   :  { %13 = vsyncpa [#allocation4 + $0x1], 0  ;;  %s784_s9 = smov 0   ;;  %s786_s10 = smov 0  }
   0x5   :  { %s788_s11 = smov 0   ;;  %s790_s12 = smov 0  }
   0x6 LB: > { %s805_s13 = sadd.s32 4294967295, %s762_s12   ;;  %s507_s14 = sadd.s32 4294967294, %s762_s12   ;;  %s762_s12 = sphi %s790_s12, %s1007_s12   ;;  %s758_s11 = sphi %s788_s11, %s1006_s11   ;;  %s754_s10 = sphi %s786_s10, %s1005_s10   ;;  %s750_s9 = sphi %s784_s9, %s1004_s9  }
   0x7   : > { %p39_p0 = scmp.ne.s32.totalorder %s754_s10, %s750_s9  ;;  %p988_p1 = scmp.eq.s32.totalorder %s805_s13, 0 }
   0x8   : > { %p90_p3 = scmp.eq.s32.totalorder %s507_s14, 1  ;;  %p508_p5 = scmp.ge.s32.totalorder %s762_s12, 1 }
   0x9   : > { %p814_p4 = por %p988_p1, %p39_p0  ;;  %p97_p7 = scmp.lt.s32.totalorder %s762_s12, 3 }
   0xa   : > { %p819_p6 = por %p90_p3, %p39_p0  ;;  %s764_s18 = smov [#allocation5]  }
   0xb   : > { %s991_s15 = scalar_select %p814_p4, 1, 0 }
   0xc   : > { %s992_s16 = scalar_select %p819_p6, 1, 0 }
   0xd   : > { %p824_p8 = pnand %p508_p5, %p97_p7  ;;  %s109_s19 = sshll.u32 %s764_s18, 4  ;;  %s828_s19 = int_to_ptr.vmem [resolvable:$true] %s109_s19 }
   0xe   : > { %s840_s21 = sadd.s32 1, %s762_s12   ;;  %s26_s22 = sadd.s32 1, %s758_s11 }
   0xf   : > { %s993_s17 = scalar_select %p824_p8, 1, 0 }
  0x10   : > { %p583_p9 = pneg %p824_p8  ;;  %s23_s23 = ssub.s32 %s762_s12, %s840_s21 }
  0x11   : > { %s634_s26 = scalar_lea.hbm %s986_s1, 3072 }
  0x12   : > { %p835_p11 = pnand %p583_p9, %p988_p1  ;;  %p635_p12 = scmp.ne.s32.totalorder %s986_s1, %s634_s26 }
  0x13   : > { %p641_p5 = scmp.lt.u32.totalorder %s634_s26, %s986_s1 }
  0x14   : > { %p636_p13 = pneg %p835_p11 }
  0x16   : > { %p637_p0 = pnand %p636_p13, %p635_p12 }
  0x18   : > { %p638_p3 = pneg %p637_p0 }
  0x1a   : > { %p643_p7 = pnand %p641_p5, %p638_p3 }
  0x1c   : > { %646 = shalt.err (!%p643_p7)
}
  0x1d   : > { %s647_s3 = scalar_lea.vmem %s828_s19, 3072  ;;  %p655_p2 = scmp.lt.s32.totalorder %s828_s19, %s828_s19 }
  0x1e   : > { %p648_p9 = scmp.ne.s32.totalorder %s828_s19, %s647_s3  ;;  %p656_p6 = scmp.lt.s32.totalorder %s647_s3, %s647_s3 }
  0x20   : > { %p650_p10 = pnand %p648_p9, %p636_p13  ;;  %p657_p4 = por %p656_p6, %p655_p2 }
  0x22   : > { %p651_p1 = pneg %p650_p10 }
  0x24   : > { %p658_p8 = pnand %p657_p4, %p651_p1 }
  0x26   : > { %661 = shalt.err (!%p658_p8)
}
  0x27   : > { %s765_s4 = smov 768   ;;  %s766_s5 = smov 48  }
  0x28   : > { %586 = dma.hbm_to_vmem [thread:$0]  (!%p835_p11), %s986_s1, 3072, %s828_s19, [#allocation6], %s765_s4, %s765_s4, %s766_s5  }
  0x29   : > { %p24_p2 = scmp.eq.s32.totalorder %s23_s23, 0  ;;  %p33_p1 = scmp.ne.s32.totalorder %s758_s11, %s754_s10 }
  0x2a   : > { %p34_p4 = scmp.eq.s32.totalorder %s762_s12, 0  ;;  %p596_p6 = scmp.lt.s32.totalorder %s762_s12, 2 }
  0x2b   : > { %s871_s8 = scalar_select %p24_p2, %s758_s11, %s26_s22  }
  0x2c   : > { %p35_p8 = por %p34_p4, %p33_p1  ;;  %p995_p10 = scmp.eq.s32.totalorder %s805_s13, 1 }
  0x2d   : > { %s123_s18 = sand.u32 1, %s758_s11   ;;  %s512_s24 = sshll.u32 %s762_s12, 7 }
  0x2e   : > { %p875_p12 = por %p995_p10, %p33_p1  ;;  %s511_s25 = sshll.u32 %s123_s18, 3 }
  0x2f   : > { %s884_s27 = scalar_lea.hbm %s985_s0, %s512_s24  ;;  %s127_s19 = scalar_lea.vmem [#allocation2], %s511_s25 }
  0x30   : > { %s134_s22 = sshll.u32 %s127_s19, 4  ;;  %p886_p11 = pnand %p596_p6, %p35_p8  ;;  %s890_s22 = int_to_ptr.vmem [resolvable:$true] %s134_s22 }
  0x31   : > { %s124_s28 = scalar_lea.sflag [#allocation3], %s123_s18  ;;  %s662_s29 = scalar_lea.hbm %s884_s27, 128 }
  0x32   : > { %p663_p13 = scmp.ne.s32.totalorder %s884_s27, %s662_s29  ;;  %p664_p0 = pneg %p886_p11 }
  0x33   : > { %s667_s4 = scalar_lea.hbm %s985_s0, 256  ;;  %p668_p7 = scmp.lt.u32.totalorder %s884_s27, %s985_s0 }
  0x34   : > { %p665_p3 = pnand %p664_p0, %p663_p13  ;;  %p669_p9 = scmp.lt.u32.totalorder %s667_s4, %s662_s29 }
  0x35   : > { %p671_p1 = scmp.lt.u32.totalorder %s662_s29, %s884_s27 }
  0x36   : > { %p666_p5 = pneg %p665_p3  ;;  %p670_p2 = por %p669_p9, %p668_p7 }
  0x38   : > { %p672_p4 = por %p671_p1, %p670_p2 }
  0x3a   : > { %p673_p6 = pnand %p672_p4, %p666_p5 }
  0x3c   : > { %676 = shalt.err (!%p673_p6)
}
  0x3d   : > { %s677_s7 = scalar_lea.vmem %s890_s22, 128  ;;  %s767_s18 = smov [#allocation2]  }
  0x3e   : > { %p678_p8 = scmp.ne.s32.totalorder %s890_s22, %s677_s7  ;;  %s682_s24 = sshll.u32 %s767_s18, 4  ;;  %s683_s24 = int_to_ptr.vmem [resolvable:$false] %s682_s24 }
  0x3f   : > { %s684_s25 = scalar_lea.vmem %s683_s24, 256  ;;  %p685_p3 = scmp.lt.s32.totalorder %s890_s22, %s683_s24 }
  0x40   : > { %p680_p10 = pnand %p678_p8, %p664_p0  ;;  %p686_p7 = scmp.lt.s32.totalorder %s684_s25, %s677_s7 }
  0x42   : > { %p681_p13 = pneg %p680_p10  ;;  %p687_p9 = por %p686_p7, %p685_p3 }
  0x44   : > { %p688_p2 = pnand %p687_p9, %p681_p13 }
  0x46   : > { %691 = shalt.err (!%p688_p2)
}
  0x47   : > { %590 = dma.hbm_to_vmem [thread:$0]  (!%p886_p11), %s884_s27, 128, %s890_s22, %s124_s28  }
  0x48   : > { %p998_p5 = scmp.ne.s32.totalorder %s993_s17, 0 }
  0x49   : > { %s920_s20 = sand.u32 (!%p998_p5), 1, %s754_s10   ;;  %p999_p0 = scmp.ne.s32.totalorder (!%p998_p5), %s991_s15, 0 }
  0x4a   : > { %143 = sbr.rel (%p998_p5) target bundleno = 568 (0x238), region = 28  ;;  %s514_s26 = sshll.u32 (!%p998_p5), %s920_s20, 3 }
  0x4b   : > { %s146_s19 = scalar_lea.sflag (!%p998_p5), [#allocation3], %s920_s20  ;;  %s149_s29 = scalar_lea.vmem (!%p998_p5), [#allocation2], %s514_s26 }
  0x51   : > { %737 = dma.done.wait (%p999_p0), %s146_s19, 128  }
  0x52   : > { %739 = vsyncadd (%p999_p0), %s146_s19, 4294967168  ;;  %p1000_p1 = scmp.eq.s32.totalorder %s805_s13, 0 }
  0x54   : > { %741 = dma.done.wait (%p1000_p1), [#allocation6], 3072   ;;  %p1001_p11 = pmov %p1000_p1 }
  0x55   : > { %vm208_vm0 = vcmask 1045504   ;;  %vm195_vm1 = vcmask 48128   ;;  %v194_v0 = vld [vmem:[%s149_s29] sm:$0x3f]  ;;  %v173_v1 = vld [vmem:[#allocation5] sm:$0xff]  ;;  %v177_v5 = vld [vmem:[#allocation5 + $0x8] sm:$0xff] }
  0x56   : > { %743 = vsyncadd (%p1001_p11), [#allocation6], 4294964224  ;;  %v174_v2 = vld [vmem:[#allocation5 + $0x30] sm:$0xff]  ;;  %541 = vmatprep.subr.msk.mxu0 %vm208_vm0, %v194_v0  ;;  %543 = vmatprep.mubr.msk.f32.mxu0 %vm195_vm1, %v173_v1  ;;  %v175_v3 = vld [vmem:[#allocation5 + $0x60] sm:$0xff]  ;;  %vm301_vm2 = vcmask 261120   ;;  %s525_s15 = sshll.u32 %s805_s13, 4 }
  0x57   : > { %542 = vmatpush3.msk.msra.mxu0 %vm208_vm0, %v194_v0  ;;  %v176_v4 = vld [vmem:[#allocation5 + $0x90] sm:$0xff]  ;;  %v179_v6 = vld [vmem:[#allocation5 + $0x68] sm:$0xff]  ;;  %v182_v7 = vld [vmem:[#allocation5 + $0x40] sm:$0xff]  ;;  %s172_s17 = scalar_lea.vmem [#allocation7], %s920_s20  ;;  %s941_s28 = scalar_lea.hbm %s987_s2, %s525_s15 }
  0x58   : > { %544 = vmatmul.mubr.msk.f32.vlgmr.msra.gmra.mrb[0].mxu0 %vm195_vm1, %v174_v2  ;;  %560 = vmatprep.mubr.msk.f32.mxu1 %vm301_vm2, %v179_v6  ;;  %v181_v8 = vld [vmem:[#allocation5 + $0x10] sm:$0xff]  ;;  %v184_v13 = vld [vmem:[#allocation5 + $0xa0] sm:$0xff]  ;;  %v178_v25 = vld [vmem:[#allocation5 + $0x38] sm:$0xff]  ;;  %s431_s27 = sshll.u32 %s172_s17, 4  ;;  %s419_s30 = scalar_lea.sflag [#allocation4], %s920_s20  ;;  %s943_s27 = int_to_ptr.vmem [resolvable:$true] %s431_s27 }
  0x59   : > { %546 = vmatprep.mubr.msk.f32.mxu0 %vm195_vm1, %v175_v3  ;;  %v183_v15 = vld [vmem:[#allocation5 + $0x70] sm:$0xff]  ;;  %v180_v26 = vld [vmem:[#allocation5 + $0x98] sm:$0xff]  ;;  %v186_v27 = vld [vmem:[#allocation5 + $0x48] sm:$0xff]  ;;  %s692_s3 = scalar_lea.vmem %s943_s27, 16  ;;  %s768_s13 = smov [#allocation7]  }
  0x5a   : > { %v185_v28 = vld [vmem:[#allocation5 + $0x18] sm:$0xff]  ;;  %v188_v29 = vld [vmem:[#allocation5 + $0xa8] sm:$0xff]  ;;  %v190_v36 = vld [vmem:[#allocation5 + $0x50] sm:$0xff]  ;;  %p693_p4 = scmp.ne.s32.totalorder %s943_s27, %s692_s3  ;;  %s696_s4 = sshll.u32 %s768_s13, 4  ;;  %s697_s4 = int_to_ptr.vmem [resolvable:$false] %s696_s4 }
  0x5b   : > { %v187_v30 = vld [vmem:[#allocation5 + $0x78] sm:$0xff]  ;;  %v189_v41 = vld [vmem:[#allocation5 + $0x20] sm:$0xff]  ;;  %v192_v49 = vld [vmem:[#allocation5 + $0xb0] sm:$0xff]  ;;  %s698_s5 = scalar_lea.vmem %s697_s4, 32  ;;  %p699_p10 = scmp.lt.s32.totalorder %s943_s27, %s697_s4 }
  0x5c   : > { %547 = vmatmul.mubr.msk.f32.gmra.mrb[2].mxu0 %vm195_vm1, %v176_v4  ;;  %v191_v42 = vld [vmem:[#allocation5 + $0x80] sm:$0xff]  ;;  %v193_v59 = vld [vmem:[#allocation5 + $0x28] ss:$0 sm:$0xff]  ;;  %p694_p6 = pnand %p693_p4, %p875_p12  ;;  %p700_p13 = scmp.lt.s32.totalorder %s698_s5, %s692_s3 }
  0x5d   : > { %557 = vmatprep.mubr.msk.f32.mxu0 %vm301_vm2, %v177_v5 }
  0x5e   : > { %p695_p8 = pneg %p694_p6  ;;  %p701_p3 = por %p700_p13, %p699_p10 }
  0x60   : > { %p702_p7 = pnand %p701_p3, %p695_p8 }
 0x12b   : > { %v545_v9 = vpop.f32.mrb[0].mxu0 }
 0x12c   : > { %v284_v10 = vadd.f32 %v545_v9, %v182_v7  ;;  %v278_v11 = vpop.f32.mrb[1].mxu0 }
 0x12d   : > { %v279_v12 = vadd.f32 %v278_v11, %v181_v8 }
 0x12e   : > { %v298_v14 = vmax.f32 %v284_v10, 0.0 }
 0x12f   : > { %v297_v16 = vmax.f32 %v279_v12, 0.0  ;;  %v548_v17 = vpop.f32.mrb[2].mxu0 }
 0x130   : > { %v294_v18 = vadd.f32 %v548_v17, %v184_v13  ;;  %v288_v19 = vpop.f32.mrb[3].mxu0 }
 0x131   : > { %v563_v20 = vpack.c.bf16 %v298_v14, %v297_v16  ;;  %v289_v21 = vadd.f32 %v288_v19, %v183_v15 }
 0x132   : > { %v300_v22 = vmax.f32 %v294_v18, 0.0 }
 0x133   : > { %v299_v23 = vmax.f32 %v289_v21, 0.0  ;;  %564 = vmatprep.subr.bf16.mxu0 %v563_v20  ;;  %571 = vmatprep.subr.bf16.mxu1 %v563_v20 }
 0x134   : > { %566 = vmatpush3.bf16.msra.mxu0 %v563_v20  ;;  %573 = vmatpush3.bf16.msra.mxu1 %v563_v20 }
 0x135   : > { %v567_v24 = vpack.c.bf16 %v300_v22, %v299_v23 }
 0x137   : > { %568 = vmatprep.subr.bf16.mxu0 %v567_v24  ;;  %572 = vmatprep.subr.bf16.mxu1 %v567_v24 }
 0x138   : > { %570 = vmatpush3.bf16.msra.mxu0 %v567_v24  ;;  %574 = vmatpush3.bf16.msra.mxu1 %v567_v24 }
 0x13b   : > { %558 = vmatmul.mubr.msk.f32.vlgmr.msra.gmra.mrb[4].mxu0 %vm301_vm2, %v178_v25  ;;  %561 = vmatmul.mubr.msk.f32.vlgmr.msra.gmra.mrb[0].mxu1 %vm301_vm2, %v180_v26 }
 0x20e   : > { %v559_v31 = vpop.f32.mrb[4].mxu0  ;;  %v562_v32 = vpop.f32.mrb[0].mxu1 }
 0x20f   : > { %v386_v33 = vadd.f32 %v559_v31, %v186_v27  ;;  %v380_v34 = vpop.f32.mrb[5].mxu0  ;;  %v390_v35 = vpop.f32.mrb[1].mxu1  ;;  %v396_v38 = vadd.f32 %v562_v32, %v188_v29 }
 0x210   : > { %v381_v37 = vadd.f32 %v380_v34, %v185_v28  ;;  %v391_v39 = vadd.f32 %v390_v35, %v187_v30 }
 0x211   : > { %v400_v40 = vmax.f32 %v386_v33, 0.0  ;;  %v402_v47 = vmax.f32 %v396_v38, 0.0 }
 0x212   : > { %v399_v43 = vmax.f32 %v381_v37, 0.0  ;;  %v401_v44 = vmax.f32 %v391_v39, 0.0 }
 0x213   : > { %v404_v45 = vmul.f32 %v400_v40, %v190_v36  ;;  %v406_v51 = vmul.f32 %v402_v47, %v192_v49 }
 0x214   : > { %v403_v46 = vmul.f32 %v399_v43, %v189_v41  ;;  %v405_v48 = vmul.f32 %v401_v44, %v191_v42 }
 0x216   : > { %v407_v50 = vadd.f32 %v404_v45, %v403_v46 }
 0x218   : > { %v408_v52 = vadd.f32 %v407_v50, %v405_v48 }
 0x21a   : > { %v409_v53 = vadd.f32 %v408_v52, %v406_v51 }
 0x21c   : > { %v410_v54 = vrot.slane %v409_v53, 4 }
 0x21e   : > { %v411_v55 = vadd.f32 %v410_v54, %v409_v53 }
 0x220   : > { %v412_v56 = vrot.slane %v411_v55, 2 }
 0x222   : > { %v413_v57 = vadd.f32 %v412_v56, %v411_v55 }
 0x224   : > { %v414_v58 = vrot.slane %v413_v57, 1 }
 0x226   : > { %v415_v60 = vadd.f32 %v414_v58, %v413_v57 }
 0x228   : > { %v416_v61 = vadd.f32 %v415_v60, %v193_v59 }
 0x22a   : > { %417 = vst [vmem:[%s172_s17] sm:$0x1] %v416_v61 }
 0x22b   : > { %705 = shalt.err (!%p702_p7)
}
 0x22c   : > { %s706_s6 = scalar_lea.hbm %s941_s28, 16  ;;  %s710_s24 = scalar_lea.hbm %s987_s2, 32 }
 0x22d   : > { %p707_p9 = scmp.ne.s32.totalorder %s941_s28, %s706_s6  ;;  %p711_p0 = scmp.lt.u32.totalorder %s941_s28, %s987_s2 }
 0x22e   : > { %p712_p1 = scmp.lt.u32.totalorder %s710_s24, %s706_s6  ;;  %p714_p4 = scmp.lt.u32.totalorder %s706_s6, %s941_s28 }
 0x22f   : > { %p708_p2 = pnand %p707_p9, %p875_p12 }
 0x230   : > { %p713_p11 = por %p712_p1, %p711_p0 }
 0x231   : > { %p709_p5 = pneg %p708_p2 }
 0x232   : > { %p715_p6 = por %p714_p4, %p713_p11 }
 0x234   : > { %p716_p8 = pnand %p715_p6, %p709_p5 }
 0x236   : > { %719 = shalt.err (!%p716_p8)
}
 0x237   : > { %581 = dma.vmem_to_hbm [thread:$0]  (%p875_p12), %s943_s27, 16, %s941_s28, %s419_s30  }
 0x238 PF: > { %s443_s26 = sand.u32 1, %s750_s9   ;;  %p1002_p10 = scmp.ne.s32.totalorder %s992_s16, 0 }
 0x239   : > { %p1003_p13 = scmp.ge.s32.totalorder %s762_s12, 2  ;;  %s444_s19 = scalar_lea.sflag [#allocation4], %s443_s26 }
 0x23b   : > { %p592_p3 = pnand %p1003_p13, %p1002_p10 }
 0x23d   : > { %745 = dma.done.wait (!%p592_p3), %s444_s19, 16  }
 0x23e   : > { %747 = vsyncadd (!%p592_p3), %s444_s19, 4294967280  ;;  %p16_p7 = scmp.ge.s32.totalorder %s840_s21, 4   ;;  %s1004_s9 = smov %s754_s10 }
 0x23f   : > { %s1005_s10 = smov %s758_s11  ;;  %s1006_s11 = smov %s871_s8 }
 0x240   : > { %s1007_s12 = smov %s840_s21  ;;  %18 = sbr.rel (!%p16_p7) target bundleno = 6 (0x6), region = 77 }
 0x247   :  { %448 = vsyncpa [#allocation3], 1 }
 0x248   :  { %450 = vsyncpa [#allocation3 + $0x1], 1 }
 0x249   :  { %451 = vsyncpa [#allocation6], 1 }
 0x24a   :  { %452 = vsyncpa [#allocation4], 1 }
 0x24b   :  { %454 = vsyncpa [#allocation4 + $0x1], 1 }

</bundles_post_ra>
